<compile_context>
chip_gen: v7x
topology: tpu7x:2x2x1
jax: 0.10.0
libtpu: 0.0.40
codegen_flags: <defaults>
</compile_context>

<pallas_src>
import functools
import numpy as np
import jax
import jax.numpy as jnp
from jax.experimental import pallas as pl
from jax.experimental.pallas import tpu as pltpu

_LANE = 128
_PAD = 128                       # zero halo width on each side (>= W+1 for all layers)
_CHANNELS = [24, 24, 12, 6, 6, 3]


def _round_up(x, m):
    return ((x + m - 1) // m) * m


# --------------------------- fused dense head kernel -------------------------
# projection (2048->512), OutputLayer (512->n_class + sigmoid) and the decoder
# projection (512->1176) fused into one pallas_call: `dense` never leaves VMEM.
# OutputLayer + decoder-proj weights are concatenated -> one lane-dense matmul.

def _dense_head_kernel(x_ref, wp_ref, bp_ref, wh_ref, bh_ref,
                       logits_ref, h_ref, *, n_class, npad):
    xb = x_ref[...].astype(jnp.bfloat16)
    dense = jnp.dot(xb, wp_ref[...],
                    preferred_element_type=jnp.float32) + bp_ref[...]
    y = jnp.dot(dense.astype(jnp.bfloat16), wh_ref[...],
                preferred_element_type=jnp.float32) + bh_ref[...]
    logits_ref[...] = jax.nn.sigmoid(y[:, :n_class])
    h_ref[...] = y[:, npad:]


def dense_head(feats, wp, bp, wh, bh, *, n_class):
    B, Din = feats.shape
    Dmid = wp.shape[1]
    npad = _round_up(n_class, _LANE)
    Dcat = wh.shape[1]
    Ddec = Dcat - npad
    kernel = functools.partial(_dense_head_kernel, n_class=n_class, npad=npad)
    return pl.pallas_call(
        kernel,
        out_shape=(jax.ShapeDtypeStruct((B, n_class), jnp.float32),
                   jax.ShapeDtypeStruct((B, Ddec), jnp.float32)),
        grid=(1,),
        in_specs=[
            pl.BlockSpec((B, Din), lambda i: (0, 0)),
            pl.BlockSpec((Din, Dmid), lambda i: (0, 0)),
            pl.BlockSpec((1, Dmid), lambda i: (0, 0)),
            pl.BlockSpec((Dmid, Dcat), lambda i: (0, 0)),
            pl.BlockSpec((1, Dcat), lambda i: (0, 0)),
        ],
        out_specs=(pl.BlockSpec((B, n_class), lambda i: (0, 0)),
                   pl.BlockSpec((B, Ddec), lambda i: (0, 0))),
        compiler_params=pltpu.CompilerParams(
            dimension_semantics=("arbitrary",)),
    )(feats, wp, bp, wh, bh)


# ------------------ ConvTranspose2d(4,2,1) + BN(eval) + act ------------------
# ConvTranspose2d(k=4, s=2, p=1): out[co, 2m+py, 2n+px] =
#   sum_{ty,tx,ci} x[ci, m+S[py,ty], n+S[px,tx]] * W[ci, co, K[py,ty], K[px,tx]]
# All (parity, shift) pairs are folded into one (4*Cout, 9*Cpad) weight.
_S = np.array([[0, -1], [1, 0]], dtype=np.int32)   # input shift per (parity, tap)
_K = np.array([[1, 3], [0, 2]], dtype=np.int32)    # kernel index per (parity, tap)
_TAP_MAP = np.zeros((4, 9, 4, 4), np.float32)      # (parity, shift, ky, kx) one-hot
for _py in range(2):
    for _px in range(2):
        _p = _py * 2 + _px
        for _ty in range(2):
            for _tx in range(2):
                _sy, _sx = int(_S[_py, _ty]), int(_S[_px, _tx])
                _s = (_sy + 1) * 3 + (_sx + 1)
                _TAP_MAP[_p, _s, int(_K[_py, _ty]), int(_K[_px, _tx])] = 1.0


def fold_conv_bn(weight, bias, gamma, beta, running_mean, running_var, eps=1e-5):
    """One-time prep (NOT in the forward): fold parity/shift/taps into a single
    (4*Cout, 9*Cpad) bf16 weight, and conv-bias + eval-mode BatchNorm into a
    per-row f32 scale/offset.  Cin is zero-padded to a multiple of 8 sublanes."""
    Cin, Cout = weight.shape[0], weight.shape[1]
    Cpad = _round_up(Cin, 8)
    wb = jnp.einsum('pskl,iokl->posi', jnp.asarray(_TAP_MAP), weight)  # (4,Cout,9,Cin)
    wb = jnp.pad(wb, ((0, 0), (0, 0), (0, 0), (0, Cpad - Cin)))
    wb = wb.reshape(4 * Cout, 9 * Cpad).astype(jnp.bfloat16)
    # TODO(synk): BatchNorm2d is folded with running statistics (eval mode);
    #             train-mode batch statistics are not implemented.
    inv_std = gamma / jnp.sqrt(running_var + eps)
    scale = jnp.tile(inv_std.reshape(Cout, 1), (4, 1)).astype(jnp.float32)
    offset = jnp.tile(((bias - running_mean) * inv_std + beta).reshape(Cout, 1),
                      (4, 1)).astype(jnp.float32)
    return wb, scale, offset


def _convt_kernel(x_ref, w_ref, sc_ref, off_ref, o_ref, xp_ref, s_ref,
                  *, H, W, Cin, Cpad, act):
    """One batch element: x (Cin, H*W) -> out (4*Cout, H*W) parity planes."""
    HW = H * W

    # 1) zero-haloed copy of the input (zero only halo strips + padded rows).
    xp_ref[:, :_PAD] = jnp.zeros((Cpad, _PAD), jnp.float32)
    xp_ref[:, _PAD + HW:] = jnp.zeros((Cpad, _PAD), jnp.float32)
    if Cpad > Cin:
        xp_ref[Cin:, _PAD:_PAD + HW] = jnp.zeros((Cpad - Cin, HW), jnp.float32)
    xp_ref[:Cin, _PAD:_PAD + HW] = x_ref[...]

    # 2) column-boundary masks, computed once and reused by 3 shifts each.
    col = jax.lax.broadcasted_iota(jnp.int32, (1, HW), 1) % W
    mask_r = col < (W - 1)     # needed when sx == +1
    mask_l = col >= 1          # needed when sx == -1

    # 3) nine shifted copies via full-width loads from the haloed buffer; a row
    #    shift that leaves the image reads the zero halo, a column shift that
    #    leaves the image is zeroed by the mask.  Stores are full-width at
    #    8-aligned sublane offsets (Cpad multiple of 8).
    for s in range(9):
        sy, sx = s // 3 - 1, s % 3 - 1
        d = sy * W + sx
        vals = xp_ref[:, _PAD + d:_PAD + d + HW]
        if sx == 1:
            vals = jnp.where(mask_r, vals, 0.0)
        elif sx == -1:
            vals = jnp.where(mask_l, vals, 0.0)
        s_ref[s * Cpad:(s + 1) * Cpad, :] = vals.astype(jnp.bfloat16)

    # 4) single large-K bf16 matmul (f32 accum) + folded bias/BN affine + act.
    y = jnp.dot(w_ref[...], s_ref[...], preferred_element_type=jnp.float32)
    y = y * sc_ref[...] + off_ref[...]
    y = jnp.tanh(y) if act == "tanh" else jnp.maximum(y, 0.0)
    o_ref[...] = y.astype(o_ref.dtype)


def conv_transpose2d_bn_act(x_flat, w_big, scale_big, offset_big, *, H, W, Cin, act):
    """ConvTranspose2d(k=4,s=2,p=1) + BatchNorm2d(eval) + activation.
    x_flat: (B, Cin, H*W) channels-first flattened NCHW -> (B, Cout, 2H, 2W)."""
    B, _, HW = x_flat.shape
    Cout4, Cpad9 = w_big.shape
    Cpad = Cpad9 // 9
    Cout = Cout4 // 4

    kernel = functools.partial(_convt_kernel, H=H, W=W, Cin=Cin, Cpad=Cpad, act=act)
    out_par = pl.pallas_call(
        kernel,
        out_shape=jax.ShapeDtypeStruct((B, Cout4, HW), jnp.float32),
        grid=(B,),
        in_specs=[
            pl.BlockSpec((None, Cin, HW), lambda b: (b, 0, 0)),
            pl.BlockSpec((Cout4, Cpad9), lambda b: (0, 0)),
            pl.BlockSpec((Cout4, 1), lambda b: (0, 0)),
            pl.BlockSpec((Cout4, 1), lambda b: (0, 0)),
        ],
        out_specs=pl.BlockSpec((None, Cout4, HW), lambda b: (b, 0, 0)),
        scratch_shapes=[pltpu.VMEM((Cpad, HW + 2 * _PAD), jnp.float32),
                        pltpu.VMEM((9 * Cpad, HW), jnp.bfloat16)],
        compiler_params=pltpu.CompilerParams(
            dimension_semantics=("parallel",)),
    )(x_flat, w_big, scale_big, offset_big)

    # glue: interleave the 4 parity planes back to (B, Cout, 2H, 2W)
    # TODO(synk): this per-layer de-interleave could be folded into the next
    #             layer's folded weight (parity-layout propagation); kept as one
    #             small XLA transpose per layer for robustness.
    out = out_par.reshape(B, 2, 2, Cout, H, W)
    out = jnp.transpose(out, (0, 3, 4, 1, 5, 2)).reshape(B, Cout, 2 * H, 2 * W)
    return out


# ------------------------------- full forward --------------------------------

def prepare_params(params):
    """One-time parameter folding (hoisted out of the forward pass)."""
    prep = {}
    prep["proj_w"] = params["proj_w"].astype(jnp.bfloat16)
    prep["proj_b"] = params["proj_b"].reshape(1, -1).astype(jnp.float32)
    Dmid = params["proj_w"].shape[1]
    n_class = params["out_w"].shape[1]
    npad = _round_up(n_class, _LANE)
    out_w_p = jnp.zeros((Dmid, npad), jnp.float32).at[:, :n_class].set(params["out_w"])
    out_b_p = jnp.zeros((npad,), jnp.float32).at[:n_class].set(params["out_b"])
    prep["head_w"] = jnp.concatenate([out_w_p, params["dec_w"]], axis=1).astype(jnp.bfloat16)
    prep["head_b"] = jnp.concatenate([out_b_p, params["dec_b"]]).reshape(1, -1).astype(jnp.float32)
    for i in range(5):
        wb, sc, off = fold_conv_bn(params[f"ct{i}_w"], params[f"ct{i}_b"],
                                   params[f"bn{i}_gamma"], params[f"bn{i}_beta"],
                                   params[f"bn{i}_mean"], params[f"bn{i}_var"])
        prep[f"w{i}"], prep[f"sc{i}"], prep[f"off{i}"] = wb, sc, off
    return prep


def extractor_512_forward(prep, resnet_features, *, n_class):
    # TODO(synk): self.ResNet is an externally injected backbone and is not part
    #             of this translation; the kernel consumes its flattened B x 2048
    #             features (== torch.flatten(self.ResNet(input), 1)).
    logits, h = dense_head(resnet_features, prep["proj_w"], prep["proj_b"],
                           prep["head_w"], prep["head_b"], n_class=n_class)
    B = h.shape[0]
    x = h.reshape(B, _CHANNELS[0], 7 * 7)       # (B, 24, 7, 7) flattened over (H, W)
    H = W = 7
    out = None
    for i in range(5):
        act = "tanh" if i == 4 else "relu"
        out = conv_transpose2d_bn_act(x, prep[f"w{i}"], prep[f"sc{i}"], prep[f"off{i}"],
                                      H=H, W=W, Cin=_CHANNELS[i], act=act)
        H, W = 2 * H, 2 * W
        if i < 4:
            x = out.reshape(B, out.shape[1], H * W)
    return logits, out                           # (B, n_class), (B, 3, 224, 224)


def init_params(key, n_class):
    ks = jax.random.split(key, 24)
    p = {}
    # other['projection']: Linear(2048, 512)  (stored pre-transposed as (Din, Dout))
    p["proj_w"] = jax.random.normal(ks[0], (2048, 512), jnp.float32) * 0.02
    p["proj_b"] = jax.random.normal(ks[1], (512,), jnp.float32) * 0.01
    # other['OutputLayer']: Linear(512, n_class): weight ~ N(0, 0.1), bias = 0
    p["out_w"] = jax.random.normal(ks[2], (512, n_class), jnp.float32) * 0.1
    p["out_b"] = jnp.zeros((n_class,), jnp.float32)
    # decoder.proj: Linear(512, 3*8*7*7)
    p["dec_w"] = jax.random.normal(ks[3], (512, 1176), jnp.float32) * 0.02
    p["dec_b"] = jax.random.normal(ks[4], (1176,), jnp.float32) * 0.01
    for i in range(5):
        cin, cout = _CHANNELS[i], _CHANNELS[i + 1]
        p[f"ct{i}_w"] = jax.random.normal(ks[5 + 2 * i], (cin, cout, 4, 4),
                                          jnp.float32) * 0.05
        p[f"ct{i}_b"] = jax.random.normal(ks[6 + 2 * i], (cout,),
                                          jnp.float32) * 0.01
        # BatchNorm2d fresh-module state: gamma=1, beta=0, mean=0, var=1
        p[f"bn{i}_gamma"] = jnp.ones((cout,), jnp.float32)
        p[f"bn{i}_beta"] = jnp.zeros((cout,), jnp.float32)
        p[f"bn{i}_mean"] = jnp.zeros((cout,), jnp.float32)
        p[f"bn{i}_var"] = jnp.ones((cout,), jnp.float32)
    return p


# ----------------------------- numpy reference -------------------------------

def _sigmoid_np(x):
    return 1.0 / (1.0 + np.exp(-x))


def _convt_bn_act_ref(x, w, b, gamma, beta, mean, var, act, eps=1e-5):
    """numpy reference: ConvTranspose2d(4,2,1) + BatchNorm2d(eval) + ReLU/Tanh."""
    B, Cin, H, W = x.shape
    Cout = w.shape[1]
    full = np.zeros((B, Cout, 2 * H + 2, 2 * W + 2), np.float64)
    contrib = np.einsum('bihw,iokl->bohwkl', x, w)
    for ky in range(4):
        for kx in range(4):
            full[:, :, ky:ky + 2 * H:2, kx:kx + 2 * W:2] += contrib[..., ky, kx]
    conv = full[:, :, 1:1 + 2 * H, 1:1 + 2 * W] + b.reshape(1, Cout, 1, 1)
    y = (conv - mean.reshape(1, Cout, 1, 1)) / np.sqrt(var.reshape(1, Cout, 1, 1) + eps)
    y = y * gamma.reshape(1, Cout, 1, 1) + beta.reshape(1, Cout, 1, 1)
    return np.tanh(y) if act == "tanh" else np.maximum(y, 0.0)


def _forward_ref(params, feats, n_class):
    f = np.asarray(feats, np.float64)
    dense = f @ np.asarray(params["proj_w"], np.float64) + np.asarray(params["proj_b"], np.float64)
    logits = _sigmoid_np(dense @ np.asarray(params["out_w"], np.float64)
                         + np.asarray(params["out_b"], np.float64))
    x = (dense @ np.asarray(params["dec_w"], np.float64)
         + np.asarray(params["dec_b"], np.float64)).reshape(f.shape[0], 24, 7, 7)
    for i in range(5):
        act = "tanh" if i == 4 else "relu"
        x = _convt_bn_act_ref(x,
                              np.asarray(params[f"ct{i}_w"], np.float64),
                              np.asarray(params[f"ct{i}_b"], np.float64),
                              np.asarray(params[f"bn{i}_gamma"], np.float64),
                              np.asarray(params[f"bn{i}_beta"], np.float64),
                              np.asarray(params[f"bn{i}_mean"], np.float64),
                              np.asarray(params[f"bn{i}_var"], np.float64), act)
    return logits, x


if __name__ == "__main__":
    key = jax.random.PRNGKey(0)
    k_feat, k_param, k_test = jax.random.split(key, 3)
    B, n_class = 2, 10

    # --- small self-check of the fused ConvTranspose2d+BN+ReLU building block ---
    kc = jax.random.split(k_test, 7)
    Ci, Co, Ht, Wt = 6, 4, 5, 7
    xt = jax.random.normal(kc[0], (B, Ci, Ht, Wt), jnp.float32)
    wt = jax.random.normal(kc[1], (Ci, Co, 4, 4), jnp.float32) * 0.1
    bt = jax.random.normal(kc[2], (Co,), jnp.float32) * 0.1
    gt = 1.0 + 0.1 * jax.random.normal(kc[3], (Co,), jnp.float32)
    bet = 0.1 * jax.random.normal(kc[4], (Co,), jnp.float32)
    mt = 0.1 * jax.random.normal(kc[5], (Co,), jnp.float32)
    vt = 0.5 + jnp.abs(jax.random.normal(kc[6], (Co,), jnp.float32))
    wbt, sct, offt = fold_conv_bn(wt, bt, gt, bet, mt, vt)
    conv_fn = jax.jit(functools.partial(conv_transpose2d_bn_act,
                                        H=Ht, W=Wt, Cin=Ci, act="relu"))
    got = conv_fn(xt.reshape(B, Ci, Ht * Wt), wbt, sct, offt)
    jax.block_until_ready(got)
    want = _convt_bn_act_ref(np.asarray(xt, np.float64), np.asarray(wt, np.float64),
                             np.asarray(bt, np.float64), np.asarray(gt, np.float64),
                             np.asarray(bet, np.float64), np.asarray(mt, np.float64),
                             np.asarray(vt, np.float64), act="relu")
    assert got.shape == (B, Co, 2 * Ht, 2 * Wt)
    blk_err = float(np.max(np.abs(np.asarray(got, np.float64) - want)))
    assert blk_err < 5e-2, f"convT block mismatch: {blk_err}"

    # --- full forward ------------------------------------------------------------
    params = init_params(k_param, n_class)
    prep = prepare_params(params)            # one-time weight folding (not per-forward)
    # stand-in for flattened ResNet features (B x 2048)
    feats = jax.random.normal(k_feat, (B, 2048), jnp.float32)

    fwd = jax.jit(functools.partial(extractor_512_forward, n_class=n_class))
    logits, recon = fwd(prep, feats)
    jax.block_until_ready((logits, recon))

    assert logits.shape == (B, n_class)
    assert recon.shape == (B, 3, 224, 224)
    assert bool(jnp.all(jnp.isfinite(logits))) and bool(jnp.all(jnp.isfinite(recon)))

    ref_logits, ref_recon = _forward_ref(params, feats, n_class)
    l_err = float(np.max(np.abs(np.asarray(logits, np.float64) - ref_logits)))
    r_err = float(np.max(np.abs(np.asarray(recon, np.float64) - ref_recon)))
    r_scale = float(np.max(np.abs(ref_recon))) + 1e-9
    assert l_err < 5e-2, f"logits mismatch: {l_err}"
    assert r_err < 0.15 * r_scale + 1e-5, f"recon mismatch: {r_err} (scale {r_scale})"
    print("KERNEL_OK")
</pallas_src>

<mosaic_0001>
module attributes {stable_mosaic.version = 11 : i64} {
  func.func @_convt_kernel(%arg0: i32, %arg1: memref<1x6x35xf32, #tpu.memory_space<vmem>>, %arg2: memref<16x72xbf16, #tpu.memory_space<vmem>>, %arg3: memref<16x1xf32, #tpu.memory_space<vmem>>, %arg4: memref<16x1xf32, #tpu.memory_space<vmem>>, %arg5: memref<1x16x35xf32, #tpu.memory_space<vmem>>, %arg6: memref<8x291xf32, #tpu.memory_space<vmem>>, %arg7: memref<72x35xbf16, #tpu.memory_space<vmem>>) attributes {dimension_semantics = [#tpu.dimension_semantics<parallel>], iteration_bounds = array<i64: 2>, scalar_prefetch = 0 : i64, scratch_operands = 2 : i64, tpu.core_type = #tpu.core_type<tc>, window_params = [{transform_indices = @transform_0, window_bounds = array<i64: 1, 6, 35>}, {pipeline_mode = #tpu.pipeline_mode<synchronous>, transform_indices = @transform_1, window_bounds = array<i64: 16, 72>}, {pipeline_mode = #tpu.pipeline_mode<synchronous>, transform_indices = @transform_2, window_bounds = array<i64: 16, 1>}, {pipeline_mode = #tpu.pipeline_mode<synchronous>, transform_indices = @transform_3, window_bounds = array<i64: 16, 1>}, {transform_indices = @transform_4, window_bounds = array<i64: 1, 16, 35>}]} {
    %cst = arith.constant 0.000000e+00 : f32
    %0 = vector.broadcast %cst : f32 to vector<8x128xf32>
    %c0 = arith.constant 0 : index
    %c0_0 = arith.constant 0 : index
    %1 = vector.load %arg6[%c0, %c0_0] : memref<8x291xf32, #tpu.memory_space<vmem>>, vector<8x128xf32>
    tpu.vector_store %arg6[%c0, %c0_0], %0 {strides = array<i32>} : memref<8x291xf32, #tpu.memory_space<vmem>>, vector<8x128xf32>,
    %cst_1 = arith.constant 0.000000e+00 : f32
    %2 = vector.broadcast %cst_1 : f32 to vector<8x128xf32>
    %c0_2 = arith.constant 0 : index
    %c163 = arith.constant 163 : index
    %3 = vector.load %arg6[%c0_2, %c163] : memref<8x291xf32, #tpu.memory_space<vmem>>, vector<8x128xf32>
    tpu.vector_store %arg6[%c0_2, %c163], %2 {strides = array<i32>} : memref<8x291xf32, #tpu.memory_space<vmem>>, vector<8x128xf32>,
    %cst_3 = arith.constant 0.000000e+00 : f32
    %4 = vector.broadcast %cst_3 : f32 to vector<2x35xf32>
    %c6 = arith.constant 6 : index
    %c128 = arith.constant 128 : index
    %5 = vector.load %arg6[%c6, %c128] : memref<8x291xf32, #tpu.memory_space<vmem>>, vector<2x35xf32>
    tpu.vector_store %arg6[%c6, %c128], %4 {strides = array<i32>} : memref<8x291xf32, #tpu.memory_space<vmem>>, vector<2x35xf32>,
    %c0_4 = arith.constant 0 : index
    %c0_5 = arith.constant 0 : index
    %c0_6 = arith.constant 0 : index
    %6 = vector.load %arg1[%c0_4, %c0_5, %c0_6] : memref<1x6x35xf32, #tpu.memory_space<vmem>>, vector<1x6x35xf32>
    %7 = vector.shape_cast %6 : vector<1x6x35xf32> to vector<6x35xf32>
    %c0_7 = arith.constant 0 : index
    %c128_8 = arith.constant 128 : index
    %8 = vector.load %arg6[%c0_7, %c128_8] : memref<8x291xf32, #tpu.memory_space<vmem>>, vector<6x35xf32>
    tpu.vector_store %arg6[%c0_7, %c128_8], %7 {strides = array<i32>} : memref<8x291xf32, #tpu.memory_space<vmem>>, vector<6x35xf32>,
    %9 = tpu.iota {dimensions = array<i32: 1>} : vector<1x35xi32>
    %c7_i32 = arith.constant 7 : i32
    %c0_i32 = arith.constant 0 : i32
    %10 = arith.cmpi eq, %c7_i32, %c0_i32 : i32
    %c1_i32 = arith.constant 1 : i32
    %11 = arith.select %10, %c1_i32, %c7_i32 : i32
    %12 = vector.broadcast %11 : i32 to vector<1x35xi32>
    %13 = arith.remsi %9, %12 : vector<1x35xi32>
    %c0_i32_9 = arith.constant 0 : i32
    %14 = vector.broadcast %c0_i32_9 : i32 to vector<1x35xi32>
    %15 = arith.cmpi ne, %13, %14 : vector<1x35xi32>
    %c0_i32_10 = arith.constant 0 : i32
    %16 = vector.broadcast %c0_i32_10 : i32 to vector<1x35xi32>
    %17 = arith.cmpi slt, %13, %16 : vector<1x35xi32>
    %c0_i32_11 = arith.constant 0 : i32
    %18 = arith.cmpi slt, %11, %c0_i32_11 : i32
    %19 = vector.broadcast %18 : i1 to vector<1x35xi1>
    %20 = vector.broadcast %19 : vector<1x35xi1> to vector<1x35xi1>
    %21 = arith.xori %17, %20 : vector<1x35xi1>
    %22 = arith.andi %21, %15 : vector<1x35xi1>
    %23 = vector.broadcast %11 : i32 to vector<1x35xi32>
    %24 = arith.addi %13, %23 : vector<1x35xi32>
    %25 = arith.select %22, %24, %13 : vector<1x35xi1>, vector<1x35xi32>
    %c6_i32 = arith.constant 6 : i32
    %26 = vector.broadcast %c6_i32 : i32 to vector<1x35xi32>
    %27 = arith.cmpi slt, %25, %26 : vector<1x35xi32>
    %c1_i32_12 = arith.constant 1 : i32
    %28 = vector.broadcast %c1_i32_12 : i32 to vector<1x35xi32>
    %29 = arith.cmpi sge, %25, %28 : vector<1x35xi32>
    %c0_13 = arith.constant 0 : index
    %c120 = arith.constant 120 : index
    %30 = vector.load %arg6[%c0_13, %c120] : memref<8x291xf32, #tpu.memory_space<vmem>>, vector<8x35xf32>
    %cst_14 = arith.constant 0.000000e+00 : f32
    %31 = vector.shape_cast %29 : vector<1x35xi1> to vector<1x35xi1>
    %32 = vector.broadcast %31 : vector<1x35xi1> to vector<8x35xi1>
    %33 = vector.broadcast %cst_14 : f32 to vector<8x35xf32>
    %34 = arith.select %32, %30, %33 : vector<8x35xi1>, vector<8x35xf32>
    %35 = arith.truncf %34 : vector<8x35xf32> to vector<8x35xbf16>
    %c0_15 = arith.constant 0 : index
    %c0_16 = arith.constant 0 : index
    %36 = vector.load %arg7[%c0_15, %c0_16] : memref<72x35xbf16, #tpu.memory_space<vmem>>, vector<8x35xbf16>
    tpu.vector_store %arg7[%c0_15, %c0_16], %35 {strides = array<i32>} : memref<72x35xbf16, #tpu.memory_space<vmem>>, vector<8x35xbf16>,
    %c0_17 = arith.constant 0 : index
    %c121 = arith.constant 121 : index
    %37 = vector.load %arg6[%c0_17, %c121] : memref<8x291xf32, #tpu.memory_space<vmem>>, vector<8x35xf32>
    %38 = arith.truncf %37 : vector<8x35xf32> to vector<8x35xbf16>
    %c8 = arith.constant 8 : index
    %c0_18 = arith.constant 0 : index
    %39 = vector.load %arg7[%c8, %c0_18] : memref<72x35xbf16, #tpu.memory_space<vmem>>, vector<8x35xbf16>
    tpu.vector_store %arg7[%c8, %c0_18], %38 {strides = array<i32>} : memref<72x35xbf16, #tpu.memory_space<vmem>>, vector<8x35xbf16>,
    %c0_19 = arith.constant 0 : index
    %c122 = arith.constant 122 : index
    %40 = vector.load %arg6[%c0_19, %c122] : memref<8x291xf32, #tpu.memory_space<vmem>>, vector<8x35xf32>
    %cst_20 = arith.constant 0.000000e+00 : f32
    %41 = vector.shape_cast %27 : vector<1x35xi1> to vector<1x35xi1>
    %42 = vector.broadcast %41 : vector<1x35xi1> to vector<8x35xi1>
    %43 = vector.broadcast %cst_20 : f32 to vector<8x35xf32>
    %44 = arith.select %42, %40, %43 : vector<8x35xi1>, vector<8x35xf32>
    %45 = arith.truncf %44 : vector<8x35xf32> to vector<8x35xbf16>
    %c16 = arith.constant 16 : index
    %c0_21 = arith.constant 0 : index
    %46 = vector.load %arg7[%c16, %c0_21] : memref<72x35xbf16, #tpu.memory_space<vmem>>, vector<8x35xbf16>
    tpu.vector_store %arg7[%c16, %c0_21], %45 {strides = array<i32>} : memref<72x35xbf16, #tpu.memory_space<vmem>>, vector<8x35xbf16>,
    %c0_22 = arith.constant 0 : index
    %c127 = arith.constant 127 : index
    %47 = vector.load %arg6[%c0_22, %c127] : memref<8x291xf32, #tpu.memory_space<vmem>>, vector<8x35xf32>
    %cst_23 = arith.constant 0.000000e+00 : f32
    %48 = vector.shape_cast %29 : vector<1x35xi1> to vector<1x35xi1>
    %49 = vector.broadcast %48 : vector<1x35xi1> to vector<8x35xi1>
    %50 = vector.broadcast %cst_23 : f32 to vector<8x35xf32>
    %51 = arith.select %49, %47, %50 : vector<8x35xi1>, vector<8x35xf32>
    %52 = arith.truncf %51 : vector<8x35xf32> to vector<8x35xbf16>
    %c24 = arith.constant 24 : index
    %c0_24 = arith.constant 0 : index
    %53 = vector.load %arg7[%c24, %c0_24] : memref<72x35xbf16, #tpu.memory_space<vmem>>, vector<8x35xbf16>
    tpu.vector_store %arg7[%c24, %c0_24], %52 {strides = array<i32>} : memref<72x35xbf16, #tpu.memory_space<vmem>>, vector<8x35xbf16>,
    %c0_25 = arith.constant 0 : index
    %c128_26 = arith.constant 128 : index
    %54 = vector.load %arg6[%c0_25, %c128_26] : memref<8x291xf32, #tpu.memory_space<vmem>>, vector<8x35xf32>
    %55 = arith.truncf %54 : vector<8x35xf32> to vector<8x35xbf16>
    %c32 = arith.constant 32 : index
    %c0_27 = arith.constant 0 : index
    %56 = vector.load %arg7[%c32, %c0_27] : memref<72x35xbf16, #tpu.memory_space<vmem>>, vector<8x35xbf16>
    tpu.vector_store %arg7[%c32, %c0_27], %55 {strides = array<i32>} : memref<72x35xbf16, #tpu.memory_space<vmem>>, vector<8x35xbf16>,
    %c0_28 = arith.constant 0 : index
    %c129 = arith.constant 129 : index
    %57 = vector.load %arg6[%c0_28, %c129] : memref<8x291xf32, #tpu.memory_space<vmem>>, vector<8x35xf32>
    %cst_29 = arith.constant 0.000000e+00 : f32
    %58 = vector.shape_cast %27 : vector<1x35xi1> to vector<1x35xi1>
    %59 = vector.broadcast %58 : vector<1x35xi1> to vector<8x35xi1>
    %60 = vector.broadcast %cst_29 : f32 to vector<8x35xf32>
    %61 = arith.select %59, %57, %60 : vector<8x35xi1>, vector<8x35xf32>
    %62 = arith.truncf %61 : vector<8x35xf32> to vector<8x35xbf16>
    %c40 = arith.constant 40 : index
    %c0_30 = arith.constant 0 : index
    %63 = vector.load %arg7[%c40, %c0_30] : memref<72x35xbf16, #tpu.memory_space<vmem>>, vector<8x35xbf16>
    tpu.vector_store %arg7[%c40, %c0_30], %62 {strides = array<i32>} : memref<72x35xbf16, #tpu.memory_space<vmem>>, vector<8x35xbf16>,
    %c0_31 = arith.constant 0 : index
    %c134 = arith.constant 134 : index
    %64 = vector.load %arg6[%c0_31, %c134] : memref<8x291xf32, #tpu.memory_space<vmem>>, vector<8x35xf32>
    %cst_32 = arith.constant 0.000000e+00 : f32
    %65 = vector.shape_cast %29 : vector<1x35xi1> to vector<1x35xi1>
    %66 = vector.broadcast %65 : vector<1x35xi1> to vector<8x35xi1>
    %67 = vector.broadcast %cst_32 : f32 to vector<8x35xf32>
    %68 = arith.select %66, %64, %67 : vector<8x35xi1>, vector<8x35xf32>
    %69 = arith.truncf %68 : vector<8x35xf32> to vector<8x35xbf16>
    %c48 = arith.constant 48 : index
    %c0_33 = arith.constant 0 : index
    %70 = vector.load %arg7[%c48, %c0_33] : memref<72x35xbf16, #tpu.memory_space<vmem>>, vector<8x35xbf16>
    tpu.vector_store %arg7[%c48, %c0_33], %69 {strides = array<i32>} : memref<72x35xbf16, #tpu.memory_space<vmem>>, vector<8x35xbf16>,
    %c0_34 = arith.constant 0 : index
    %c135 = arith.constant 135 : index
    %71 = vector.load %arg6[%c0_34, %c135] : memref<8x291xf32, #tpu.memory_space<vmem>>, vector<8x35xf32>
    %72 = arith.truncf %71 : vector<8x35xf32> to vector<8x35xbf16>
    %c56 = arith.constant 56 : index
    %c0_35 = arith.constant 0 : index
    %73 = vector.load %arg7[%c56, %c0_35] : memref<72x35xbf16, #tpu.memory_space<vmem>>, vector<8x35xbf16>
    tpu.vector_store %arg7[%c56, %c0_35], %72 {strides = array<i32>} : memref<72x35xbf16, #tpu.memory_space<vmem>>, vector<8x35xbf16>,
    %c0_36 = arith.constant 0 : index
    %c136 = arith.constant 136 : index
    %74 = vector.load %arg6[%c0_36, %c136] : memref<8x291xf32, #tpu.memory_space<vmem>>, vector<8x35xf32>
    %cst_37 = arith.constant 0.000000e+00 : f32
    %75 = vector.shape_cast %27 : vector<1x35xi1> to vector<1x35xi1>
    %76 = vector.broadcast %75 : vector<1x35xi1> to vector<8x35xi1>
    %77 = vector.broadcast %cst_37 : f32 to vector<8x35xf32>
    %78 = arith.select %76, %74, %77 : vector<8x35xi1>, vector<8x35xf32>
    %79 = arith.truncf %78 : vector<8x35xf32> to vector<8x35xbf16>
    %c64 = arith.constant 64 : index
    %c0_38 = arith.constant 0 : index
    %80 = vector.load %arg7[%c64, %c0_38] : memref<72x35xbf16, #tpu.memory_space<vmem>>, vector<8x35xbf16>
    tpu.vector_store %arg7[%c64, %c0_38], %79 {strides = array<i32>} : memref<72x35xbf16, #tpu.memory_space<vmem>>, vector<8x35xbf16>,
    %c0_39 = arith.constant 0 : index
    %c0_40 = arith.constant 0 : index
    %81 = vector.load %arg2[%c0_39, %c0_40] : memref<16x72xbf16, #tpu.memory_space<vmem>>, vector<16x72xbf16>
    %c0_41 = arith.constant 0 : index
    %c0_42 = arith.constant 0 : index
    %82 = vector.load %arg7[%c0_41, %c0_42] : memref<72x35xbf16, #tpu.memory_space<vmem>>, vector<72x35xbf16>
    %cst_43 = arith.constant dense<0.000000e+00> : vector<16x35xf32>
    %83 = tpu.matmul %81, %82, %cst_43 {dimension_numbers = #tpu.dot_dimension_numbers<[1], [0], [0], [1], [0, 0, 1, 1], [], []>} : vector<16x72xbf16>, vector<72x35xbf16>, vector<16x35xf32> -> vector<16x35xf32>
    %c0_44 = arith.constant 0 : index
    %c0_45 = arith.constant 0 : index
    %84 = vector.load %arg3[%c0_44, %c0_45] : memref<16x1xf32, #tpu.memory_space<vmem>>, vector<16x1xf32>
    %85 = vector.broadcast %84 : vector<16x1xf32> to vector<16x35xf32>
    %86 = arith.mulf %83, %85 : vector<16x35xf32>
    %c0_46 = arith.constant 0 : index
    %c0_47 = arith.constant 0 : index
    %87 = vector.load %arg4[%c0_46, %c0_47] : memref<16x1xf32, #tpu.memory_space<vmem>>, vector<16x1xf32>
    %88 = vector.broadcast %87 : vector<16x1xf32> to vector<16x35xf32>
    %89 = arith.addf %86, %88 : vector<16x35xf32>
    %cst_48 = arith.constant 0.000000e+00 : f32
    %90 = vector.broadcast %cst_48 : f32 to vector<16x35xf32>
    %91 = arith.maximumf %89, %90 : vector<16x35xf32>
    %c0_49 = arith.constant 0 : index
    %c0_50 = arith.constant 0 : index
    %c0_51 = arith.constant 0 : index
    %92 = vector.load %arg5[%c0_49, %c0_50, %c0_51] : memref<1x16x35xf32, #tpu.memory_space<vmem>>, vector<1x16x35xf32>
    %93 = vector.shape_cast %92 : vector<1x16x35xf32> to vector<16x35xf32>
    %94 = vector.shape_cast %91 : vector<16x35xf32> to vector<1x16x35xf32>
    tpu.vector_store %arg5[%c0_49, %c0_50, %c0_51], %94 {strides = array<i32>} : memref<1x16x35xf32, #tpu.memory_space<vmem>>, vector<1x16x35xf32>,
    return
  }
  func.func @transform_0(%arg0: i32) -> (i32, i32, i32) {
    %c0_i32 = arith.constant 0 : i32
    %c0_i32_0 = arith.constant 0 : i32
    %c0_i32_1 = arith.constant 0 : i32
    return %arg0, %c0_i32, %c0_i32_0 : i32, i32, i32
  }
  func.func @transform_1(%arg0: i32) -> (i32, i32) {
    %c0_i32 = arith.constant 0 : i32
    %c0_i32_0 = arith.constant 0 : i32
    %c0_i32_1 = arith.constant 0 : i32
    return %c0_i32, %c0_i32_0 : i32, i32
  }
  func.func @transform_2(%arg0: i32) -> (i32, i32) {
    %c0_i32 = arith.constant 0 : i32
    %c0_i32_0 = arith.constant 0 : i32
    %c0_i32_1 = arith.constant 0 : i32
    return %c0_i32, %c0_i32_0 : i32, i32
  }
  func.func @transform_3(%arg0: i32) -> (i32, i32) {
    %c0_i32 = arith.constant 0 : i32
    %c0_i32_0 = arith.constant 0 : i32
    %c0_i32_1 = arith.constant 0 : i32
    return %c0_i32, %c0_i32_0 : i32, i32
  }
  func.func @transform_4(%arg0: i32) -> (i32, i32, i32) {
    %c0_i32 = arith.constant 0 : i32
    %c0_i32_0 = arith.constant 0 : i32
    %c0_i32_1 = arith.constant 0 : i32
    return %arg0, %c0_i32, %c0_i32_0 : i32, i32, i32
  }
}

</mosaic_0001>

<bundles_post_ra>
// kernel: conv_transpose2d_bn_act.1
= control target key start
LH: loop header
LB: loop body
LE: loop exit
PB: predicated region body
PF: predicated region fallthrough
CT: control target
= control target key end

     0   :  { %s637_s15 = smov 0   ;;  %s704_s0 = inlined_call_operand.vmem [shape: f32[2,6,35], index: 0, kind: input, shape index: {}]   ;;  %s705_s1 = inlined_call_operand.vmem [shape: bf16[16,72], index: 1, kind: input, shape index: {}]   ;;  %s706_s2 = inlined_call_operand.vmem [shape: f32[16,1], index: 2, kind: input, shape index: {}]   ;;  %s707_s3 = inlined_call_operand.vmem [shape: f32[16,1], index: 3, kind: input, shape index: {}]   ;;  %s708_s4 = inlined_call_operand.vmem [shape: f32[2,16,35], index: 4, kind: output, shape index: {}]  }
   0x1 LB: > { %s507_s16 = sadd.s32 4294967295, %s599_s15   ;;  %p511_p0 = scmp.ge.s32.totalorder %s599_s15, 1  ;;  %s599_s15 = sphi %s637_s15, %s14_s15  }
   0x2   : > { %p161_p1 = scmp.lt.s32.totalorder %s599_s15, 3 }
   0x4   : > { %p162_p2 = pnand %p511_p0, %p161_p1 }
   0x5   : > { %p186_p3 = scmp.lt.s32.totalorder (!%p162_p2), %s507_s16, 1  ;;  %vm197_vm0 = vcmask (!%p162_p2), 1047832   ;;  %vm201_vm1 = vcmask (!%p162_p2), 285702   ;;  %v601_v0 = vmov (!%p162_p2), 0.0   ;;  %v602_v1 = vmov (!%p162_p2), 0   ;;  %s603_s21 = smov (!%p162_p2), 6  }
   0x6   : > { %165 = sbr.rel (%p162_p2) target bundleno = 397 (0x18d), region = 36  ;;  %198 = vst.msk [vmem:[#allocation2 + $0x8] sm:$0xff] (!%p162_p2), %vm197_vm0, %v601_v0  ;;  %535 = vmatprep.subr.bf16.mxu0 (!%p162_p2), %v601_v0  ;;  %586 = vset.pattern.permute.xlu1 (!%p162_p2), %v602_v1  ;;  %vm204_vm2 = vcmask (!%p162_p2), 283648   ;;  %vm244_vm3 = vcmask (!%p162_p2), 281600   ;;  %s604_s22 = smov (!%p162_p2), 8   ;;  %vm611_vm4 = vmmov (!%p162_p2), 0   ;;  %v206_v11 = vlaneseq (!%p162_p2) }
   0x7   : > { %202 = vst.msk [vmem:[#allocation2 + $0x8] sm:$0xc0] (!%p162_p2), %vm201_vm1, %v601_v0  ;;  %585 = vset.pattern.permute.xlu0 (!%p162_p2), %v602_v1  ;;  %s605_s23 = smov (!%p162_p2), 1   ;;  %s606_s24 = smov (!%p162_p2), 7   ;;  %545 = vmatprep.mubr.msk.bf16.mxu0 (!%p162_p2), %vm611_vm4, %v601_v0  ;;  %v421_v7 = vld [vmem:[%s706_s2 + $0x8] sm:$0xff] (!%p162_p2)  ;;  %v420_v8 = vld [vmem:[%s706_s2] sm:$0xff] (!%p162_p2) }
   0x8   : > { %s607_s25 = smov (!%p162_p2), 127   ;;  %s608_s26 = smov (!%p162_p2), 122   ;;  %v434_v9 = vld [vmem:[%s707_s3] sm:$0xff] (!%p162_p2)  ;;  %v435_v10 = vld [vmem:[%s707_s3 + $0x8] sm:$0xff] (!%p162_p2)  ;;  %vm199_vm5 = vcmask (!%p162_p2), 285696   ;;  %v207_v12 = vand.u32 (!%p162_p2), 127, %v206_v11 }
   0x9   : > { %s609_s27 = smov (!%p162_p2), 121   ;;  %s610_s28 = smov (!%p162_p2), 120   ;;  %vm272_vm11 = vcmask (!%p162_p2), 48128   ;;  %vm239_vm13 = vcmask (!%p162_p2), 64512   ;;  %vm258_vm14 = vcmask (!%p162_p2), 56320   ;;  %vm286_vm15 = vcmask (!%p162_p2), 7168  }
   0xa   : > { %v670_v13 = vmul.u32.u64.low (!%p162_p2), 2454267026, %v207_v12  ;;  %v671_v14 = vmul.u32.u64.high 2454267026, %v207_v12, %v670_v13  ;;  %vm375_vm0 = vcmask (!%p162_p2), 1043456   ;;  %v592_v59 = vld [vmem:[%s705_s1] sm:$0xff] (!%p162_p2)   ;;  %vm371_vm1 = vcmask (!%p162_p2), 588800  }
   0xc   : > { %vm214_vm6 = vc.u32 (!%p162_p2), %v670_v13, 2454267026 }
   0xd   : > { %s710_s16 = smov (!%p186_p3, %s507_s16), 1  ;;  %v215_v15 = vsel %vm214_vm6, 1, %v602_v1 }
   0xe   : > { %s512_s17 = sshll.u32 %s710_s16, 3  ;;  %v216_v16 = vadd.s32 %v671_v14, %v215_v15  ;;  %s526_s13 = sshll.u32 %s710_s16, 4 }
   0xf   : > { %s189_s20 = scalar_lea.vmem %s704_s0, %s512_s17  ;;  %s194_s18 = scalar_lea.vmem %s708_s4, %s526_s13 }
  0x10   : > { %v203_v2 = vld [vmem:[%s189_s20] sm:$0x3f]  ;;  %v217_v17 = vshrl.u32 %v216_v16, 2 }
  0x11   : > { %205 = vst.msk [vmem:[#allocation2 + $0x8] sm:$0x3f] %vm204_vm2, %v203_v2 }
  0x12   : > { %v218_v18 = vmul.u32 7, %v217_v17 }
  0x14   : > { %v219_v19 = vsub.s32 %v207_v12, %v218_v18 }
  0x16   : > { %vm222_vm7 = vcmp.ne.s32.totalorder %v219_v19, 0  ;;  %vm223_vm8 = vcmp.lt.s32.totalorder %v219_v19, 0  ;;  %v225_v20 = vadd.s32 7, %v219_v19 }
  0x17   : > { %vm224_vm9 = vmand %vm223_vm8, %vm222_vm7 }
  0x18   : > { %v263_v3 = vld [vmem:[#allocation2 + $0x8] sm:$0xff]  ;;  %v226_v21 = vsel %vm224_vm9, %v225_v20, %v219_v19 }
  0x19   : > { %v575_v4 = vpack.i.bf16 %v263_v3, %v601_v0  ;;  %v528_v5 = vpack.c.bf16 %v263_v3, %v263_v3  ;;  %v527_v6 = vpack.c.bf16 %v263_v3, %v601_v0  ;;  %vm227_vm10 = vcmp.lt.s32.totalorder %v226_v21, 6 }
  0x1a   : > { %vm228_vm12 = vcmp.ge.s32.totalorder %v226_v21, 1 }
  0x1b   : > { %576 = vrot.lane.b32.xlu1 %v575_v4, %s603_s21  ;;  %571 = vrot.lane.b32.xlu0 %v575_v4, %s604_s22  ;;  %294 = vst.msk [vmem:[#allocation3 + $0x10] sm:$0xf] %vm244_vm3, %v528_v5 }
  0x1f   : > { %581 = vrot.lane.b32.xlu1 %v575_v4, %s605_s23  ;;  %255 = vrot.lane.b32.xlu0 %v527_v6, %s606_s24 }
  0x23   : > { %297 = vrot.lane.b32.xlu0 %v263_v3, %s607_s25  ;;  %305 = vrot.lane.b32.xlu1 %v263_v3, %s608_s26 }
  0x27   : > { %316 = vrot.lane.b32.xlu0 %v528_v5, %s609_s27  ;;  %322 = vrot.lane.b32.xlu1 %v263_v3, %s610_s28 }
  0x2b   : > { %429 = vperm.xlu1 %586, %v421_v7   ;;  %424 = vperm.xlu0 %585, %v420_v8  }
  0x2f   : > { %438 = vperm.xlu1 %586, %v434_v9   ;;  %443 = vperm.xlu0 %585, %v435_v10  }
  0x8d   : > { %v577_v22 = vpop.permute.xlu1 %576  ;;  %v572_v23 = vpop.permute.xlu0 %571 }
  0x8e   : > { %v579_v24 = vunpack.i.h.bf16 %v577_v22  ;;  %v578_v25 = vunpack.i.l.bf16 %v577_v22  ;;  %v574_v26 = vunpack.i.h.bf16 %v572_v23  ;;  %v573_v27 = vunpack.i.l.bf16 %v572_v23 }
  0x90   : > { %v273_v28 = vsel %vm272_vm11, %v578_v25, %v579_v24  ;;  %v240_v29 = vsel %vm239_vm13, %v573_v27, %v574_v26 }
  0x91   : > { %v582_v30 = vpop.permute.xlu1 %581  ;;  %v256_v31 = vpop.permute.xlu0 %255  ;;  %v275_v32 = vsel %vm227_vm10, %v273_v28, 0.0  ;;  %v242_v33 = vsel %vm228_vm12, %v240_v29, 0.0 }
  0x92   : > { %v584_v34 = vunpack.i.h.bf16 %v582_v30  ;;  %v583_v35 = vunpack.i.l.bf16 %v582_v30  ;;  %v257_v36 = vrot.slane %v256_v31, 4  ;;  %v276_v37 = vpack.c.bf16 %v275_v32, %v275_v32 }
  0x93   : > { %v243_v38 = vpack.c.bf16 %v242_v33, %v242_v33 }
  0x94   : > { %v259_v39 = vsel %vm258_vm14, %v256_v31, %v257_v36  ;;  %277 = vst.msk [vmem:[#allocation3 + $0x8] sm:$0xf] %vm244_vm3, %v276_v37  ;;  %v287_v40 = vsel %vm286_vm15, %v583_v35, %v584_v34 }
  0x95   : > { %261 = vst.msk [vmem:[#allocation3 + $0x4] sm:$0xf] %vm244_vm3, %v259_v39  ;;  %v298_v41 = vpop.permute.xlu0 %297  ;;  %v306_v42 = vpop.permute.xlu1 %305  ;;  %245 = vst.msk [vmem:[#allocation3] sm:$0xf] %vm244_vm3, %v243_v38  ;;  %v289_v43 = vsel %vm228_vm12, %v287_v40, 0.0 }
  0x96   : > { %v300_v44 = vsel %vm227_vm10, %v298_v41, 0.0  ;;  %v290_v45 = vpack.c.bf16 %v289_v43, %v289_v43  ;;  %v308_v46 = vsel %vm228_vm12, %v306_v42, 0.0 }
  0x97   : > { %v301_v47 = vpack.c.bf16 %v300_v44, %v300_v44  ;;  %v309_v48 = vpack.c.bf16 %v308_v46, %v308_v46 }
  0x98   : > { %291 = vst.msk [vmem:[#allocation3 + $0xc] sm:$0xf] %vm244_vm3, %v290_v45 }
  0x99   : > { %302 = vst.msk [vmem:[#allocation3 + $0x14] sm:$0xf] %vm244_vm3, %v301_v47  ;;  %310 = vst.msk [vmem:[#allocation3 + $0x18] sm:$0xf] %vm244_vm3, %v309_v48  ;;  %v317_v49 = vpop.permute.xlu0 %316  ;;  %v323_v50 = vpop.permute.xlu1 %322 }
  0x9a   : > { %319 = vst.msk [vmem:[#allocation3 + $0x1c] sm:$0xf] %vm244_vm3, %v317_v49  ;;  %v325_v51 = vsel %vm227_vm10, %v323_v50, 0.0 }
  0x9b   : > { %v326_v52 = vpack.c.bf16 %v325_v51, %v325_v51 }
  0x9c   : > { %v587_v53 = vld [vmem:[#allocation3] sm:$0xff]  }
  0x9d   : > { %327 = vst.msk [vmem:[#allocation3 + $0x20] sm:$0xf] %vm244_vm3, %v326_v52  ;;  %536 = vmatpush3.bf16.msra.mxu0 %v587_v53 }
  0x9e   : > { %537 = vmatprep.subr.bf16.mxu0 %v601_v0 }
  0x9f   : > { %v588_v54 = vld [vmem:[#allocation3 + $0x8] sm:$0xff]  }
  0xa0   : > { %v589_v55 = vld [vmem:[#allocation3 + $0x10] sm:$0xff]  }
  0xa1   : > { %538 = vmatpush3.bf16.msra.mxu0 %v588_v54  ;;  %v590_v56 = vld [vmem:[#allocation3 + $0x18] sm:$0xff]  }
  0xa2   : > { %539 = vmatprep.subr.bf16.mxu0 %v601_v0 }
  0xa4   : > { %v591_v57 = vld [vmem:[#allocation3 + $0x20] ss:$0 sps:$4 sm:$0xff]  }
  0xa5   : > { %540 = vmatpush3.bf16.msra.mxu0 %v589_v55  ;;  %v377_v58 = vsel %vm375_vm0, %v591_v57, 0 }
  0xa6   : > { %541 = vmatprep.subr.bf16.mxu0 %v601_v0 }
  0xa9   : > { %542 = vmatpush3.bf16.msra.mxu0 %v590_v56 }
  0xaa   : > { %543 = vmatprep.subr.bf16.mxu0 %v601_v0  ;;  %v430_v60 = vpop.permute.xlu1 %429  ;;  %v425_v61 = vpop.permute.xlu0 %424 }
  0xad   : > { %544 = vmatpush3.bf16.msra.mxu0 %v377_v58 }
  0xae   : > { %v439_v2 = vpop.permute.xlu1 %438  ;;  %v444_v0 = vpop.permute.xlu0 %443 }
  0xb0   : > { %546 = vmatmul.mubr.msk.bf16.vlgmr.msra.gmra.mrb[0].mxu0 %vm371_vm1, %v592_v59 }
 0x183   : > { %v413_v62 = vpop.f32.mrb[0].mxu0 }
 0x184   : > { %v432_v63 = vmul.f32 %v425_v61, %v413_v62  ;;  %v547_v1 = vpop.f32.mrb[1].mxu0 }
 0x185   : > { %v416_v3 = vpop.f32.mrb[2].mxu0 }
 0x186   : > { %v446_v4 = vadd.f32 %v439_v2, %v432_v63  ;;  %v433_v5 = vmul.f32 %v430_v60, %v416_v3  ;;  %v548_v6 = vpop.f32.mrb[3].mxu0 }
 0x188   : > { %v448_v7 = vmax.f32 %v446_v4, 0.0  ;;  %v447_v8 = vadd.f32 %v444_v0, %v433_v5 }
 0x18a   : > { %450 = vst.msk [vmem:[%s194_s18] sm:$0xff] %vm199_vm5, %v448_v7  ;;  %v449_v9 = vmax.f32 %v447_v8, 0.0 }
 0x18c   : > { %451 = vst.msk [vmem:[%s194_s18 + $0x8] sm:$0xff] %vm199_vm5, %v449_v9 }
 0x18d PF: > { %s14_s15 = sadd.s32 1, %s599_s15  }
 0x18e   : > { %p11_p4 = scmp.ge.s32.totalorder %s14_s15, 4  }
 0x190   :  { %13 = sbr.rel (!%p11_p4) target bundleno = 1 (0x1), region = 66 }

</bundles_post_ra>
